<compile_context>
chip_gen: v7x
topology: tpu7x:2x2x1
jax: 0.10.0
libtpu: 0.0.40
codegen_flags: <defaults>
</compile_context>

<pallas_src>
import jax
import jax.numpy as jnp
from jax.experimental import pallas as pl
from jax.experimental.pallas import tpu as pltpu

_LANE = 128


def qnetwork_kernel(x_ref, w1_ref, b1_ref, w2_ref, b2_ref, w3_ref, b3_ref, o_ref):
    # torch does x.float(); here the matmuls run with bf16 operands on the MXU
    # (f32 accumulation via preferred_element_type), bias + ReLU stay in f32.
    x = x_ref[...].astype(jnp.bfloat16)

    h1 = jnp.dot(x, w1_ref[...], preferred_element_type=jnp.float32) + b1_ref[...]
    h1 = jnp.maximum(h1, 0.0).astype(jnp.bfloat16)

    h2 = jnp.dot(h1, w2_ref[...], preferred_element_type=jnp.float32) + b2_ref[...]
    h2 = jnp.maximum(h2, 0.0).astype(jnp.bfloat16)

    # fc3 (no activation) -> lane-dense (padded to 128) f32 store
    o_ref[...] = jnp.dot(h2, w3_ref[...], preferred_element_type=jnp.float32) + b3_ref[...]


def prepare_qnetwork_params(params):
    """One-time glue hoisted out of the hot path:
       - transpose PyTorch-style (out, in) weights to (in, out)
       - cast matmul operands to bf16
       - zero-pad the last layer to 128 output lanes (unmasked stores)
    """
    out_dim = params["w3"].shape[0]
    out_pad = ((out_dim + _LANE - 1) // _LANE) * _LANE

    w1 = params["w1"].T.astype(jnp.bfloat16)                      # (in, 64)
    w2 = params["w2"].T.astype(jnp.bfloat16)                      # (64, 64)
    w3 = jnp.zeros((params["w3"].shape[1], out_pad), jnp.bfloat16)
    w3 = w3.at[:, :out_dim].set(params["w3"].T.astype(jnp.bfloat16))

    b1 = params["b1"].astype(jnp.float32).reshape(1, -1)
    b2 = params["b2"].astype(jnp.float32).reshape(1, -1)
    b3 = jnp.zeros((1, out_pad), jnp.float32)
    b3 = b3.at[:, :out_dim].set(params["b3"].astype(jnp.float32))

    return {"w1": w1, "b1": b1, "w2": w2, "b2": b2, "w3": w3, "b3": b3,
            "out_dim": out_dim, "out_pad": out_pad}


def qnetwork_forward(x, prepared, *, bm=None):
    """x: (B, input_size).  prepared: output of prepare_qnetwork_params."""
    w1, b1 = prepared["w1"], prepared["b1"]
    w2, b2 = prepared["w2"], prepared["b2"]
    w3, b3 = prepared["w3"], prepared["b3"]
    out_dim, out_pad = prepared["out_dim"], prepared["out_pad"]

    B, in_dim = x.shape

    # Batch tile: 8-aligned, large (<=512) to amortize ~0.35us/step pipeline
    # overhead and fill the MXU M-dimension; pad the batch to a tile multiple
    # (padded garbage rows are sliced off after the call).
    b8 = ((B + 7) // 8) * 8
    if bm is None:
        bm = min(512, b8)
    bm = max(8, (bm // 8) * 8)
    b_padded = pl.cdiv(b8, bm) * bm
    if b_padded != B:
        x = jnp.pad(x, ((0, b_padded - B), (0, 0)))

    grid = (b_padded // bm,)

    out_padded = pl.pallas_call(
        qnetwork_kernel,
        out_shape=jax.ShapeDtypeStruct((b_padded, out_pad), jnp.float32),
        grid_spec=pltpu.PrefetchScalarGridSpec(
            num_scalar_prefetch=0,
            grid=grid,
            in_specs=[
                pl.BlockSpec((bm, in_dim), lambda i: (i, 0)),   # x tile
                pl.BlockSpec(w1.shape, lambda i: (0, 0)),       # w1 (resident)
                pl.BlockSpec(b1.shape, lambda i: (0, 0)),       # b1
                pl.BlockSpec(w2.shape, lambda i: (0, 0)),       # w2
                pl.BlockSpec(b2.shape, lambda i: (0, 0)),       # b2
                pl.BlockSpec(w3.shape, lambda i: (0, 0)),       # w3 (padded lanes)
                pl.BlockSpec(b3.shape, lambda i: (0, 0)),       # b3 (padded lanes)
            ],
            out_specs=pl.BlockSpec((bm, out_pad), lambda i: (i, 0)),
        ),
        compiler_params=pltpu.CompilerParams(
            dimension_semantics=("parallel",),
            vmem_limit_bytes=64 * 1024 * 1024,
        ),
    )(x, w1, b1, w2, b2, w3, b3)

    return out_padded[:B, :out_dim]


def init_qnetwork_params(key, input_size, output_size):
    """Deterministic init mimicking PyTorch nn.Linear default (U[-1/sqrt(fan_in), +])."""
    def linear_init(k, fan_in, fan_out):
        kw, kb = jax.random.split(k)
        bound = 1.0 / jnp.sqrt(fan_in)
        w = jax.random.uniform(kw, (fan_out, fan_in), jnp.float32, -bound, bound)
        b = jax.random.uniform(kb, (fan_out,), jnp.float32, -bound, bound)
        return w, b

    k1, k2, k3 = jax.random.split(key, 3)
    w1, b1 = linear_init(k1, input_size, 64)
    w2, b2 = linear_init(k2, 64, 64)
    w3, b3 = linear_init(k3, 64, output_size)
    return {"w1": w1, "b1": b1, "w2": w2, "b2": b2, "w3": w3, "b3": b3}


def qnetwork_ref(x, params):
    """Pure-JAX f32 reference for correctness check."""
    x = x.astype(jnp.float32)
    h1 = jnp.maximum(x @ params["w1"].T + params["b1"], 0.0)
    h2 = jnp.maximum(h1 @ params["w2"].T + params["b2"], 0.0)
    return h2 @ params["w3"].T + params["b3"]


if __name__ == "__main__":
    input_size = 16
    output_size = 4

    key = jax.random.PRNGKey(0)
    kx1, kx2, kp = jax.random.split(key, 3)

    params = init_qnetwork_params(kp, input_size, output_size)
    prepared = prepare_qnetwork_params(params)  # one-time, off the hot path

    # tile-aligned batch
    x1 = jax.random.normal(kx1, (8, input_size), dtype=jnp.float32)
    out1 = jax.block_until_ready(qnetwork_forward(x1, prepared))
    ref1 = qnetwork_ref(x1, params)
    assert out1.shape == (8, output_size)
    assert jnp.allclose(out1, ref1, atol=5e-2, rtol=5e-2), "mismatch vs reference (B=8)"

    # non-multiple batch exercises the pad-and-slice path
    x2 = jax.random.normal(kx2, (10, input_size), dtype=jnp.float32)
    out2 = jax.block_until_ready(qnetwork_forward(x2, prepared))
    ref2 = qnetwork_ref(x2, params)
    assert out2.shape == (10, output_size)
    assert jnp.allclose(out2, ref2, atol=5e-2, rtol=5e-2), "mismatch vs reference (B=10)"

    print("KERNEL_OK")
</pallas_src>

<mosaic_0001>
module attributes {stable_mosaic.version = 11 : i64} {
  func.func @qnetwork_kernel(%arg0: i32, %arg1: memref<8x16xf32, #tpu.memory_space<vmem>>, %arg2: memref<16x64xbf16, #tpu.memory_space<vmem>>, %arg3: memref<1x64xf32, #tpu.memory_space<vmem>>, %arg4: memref<64x64xbf16, #tpu.memory_space<vmem>>, %arg5: memref<1x64xf32, #tpu.memory_space<vmem>>, %arg6: memref<64x128xbf16, #tpu.memory_space<vmem>>, %arg7: memref<1x128xf32, #tpu.memory_space<vmem>>, %arg8: memref<8x128xf32, #tpu.memory_space<vmem>>) attributes {dimension_semantics = [#tpu.dimension_semantics<parallel>], iteration_bounds = array<i64: 1>, scalar_prefetch = 0 : i64, scratch_operands = 0 : i64, tpu.core_type = #tpu.core_type<tc>, window_params = [{transform_indices = @transform_0, window_bounds = array<i64: 8, 16>}, {pipeline_mode = #tpu.pipeline_mode<synchronous>, transform_indices = @transform_1, window_bounds = array<i64: 16, 64>}, {pipeline_mode = #tpu.pipeline_mode<synchronous>, transform_indices = @transform_2, window_bounds = array<i64: 1, 64>}, {pipeline_mode = #tpu.pipeline_mode<synchronous>, transform_indices = @transform_3, window_bounds = array<i64: 64, 64>}, {pipeline_mode = #tpu.pipeline_mode<synchronous>, transform_indices = @transform_4, window_bounds = array<i64: 1, 64>}, {pipeline_mode = #tpu.pipeline_mode<synchronous>, transform_indices = @transform_5, window_bounds = array<i64: 64, 128>}, {pipeline_mode = #tpu.pipeline_mode<synchronous>, transform_indices = @transform_6, window_bounds = array<i64: 1, 128>}, {transform_indices = @transform_7, window_bounds = array<i64: 8, 128>}]} {
    %c0 = arith.constant 0 : index
    %c0_0 = arith.constant 0 : index
    %0 = vector.load %arg1[%c0, %c0_0] : memref<8x16xf32, #tpu.memory_space<vmem>>, vector<8x16xf32>
    %1 = arith.truncf %0 : vector<8x16xf32> to vector<8x16xbf16>
    %c0_1 = arith.constant 0 : index
    %c0_2 = arith.constant 0 : index
    %2 = vector.load %arg2[%c0_1, %c0_2] : memref<16x64xbf16, #tpu.memory_space<vmem>>, vector<16x64xbf16>
    %cst = arith.constant dense<0.000000e+00> : vector<8x64xf32>
    %3 = tpu.matmul %1, %2, %cst {dimension_numbers = #tpu.dot_dimension_numbers<[1], [0], [0], [1], [0, 0, 1, 1], [], []>} : vector<8x16xbf16>, vector<16x64xbf16>, vector<8x64xf32> -> vector<8x64xf32>
    %c0_3 = arith.constant 0 : index
    %c0_4 = arith.constant 0 : index
    %4 = vector.load %arg3[%c0_3, %c0_4] : memref<1x64xf32, #tpu.memory_space<vmem>>, vector<1x64xf32>
    %5 = vector.broadcast %4 : vector<1x64xf32> to vector<8x64xf32>
    %6 = arith.addf %3, %5 : vector<8x64xf32>
    %cst_5 = arith.constant 0.000000e+00 : f32
    %7 = vector.broadcast %cst_5 : f32 to vector<8x64xf32>
    %8 = arith.maximumf %6, %7 : vector<8x64xf32>
    %9 = arith.truncf %8 : vector<8x64xf32> to vector<8x64xbf16>
    %c0_6 = arith.constant 0 : index
    %c0_7 = arith.constant 0 : index
    %10 = vector.load %arg4[%c0_6, %c0_7] : memref<64x64xbf16, #tpu.memory_space<vmem>>, vector<64x64xbf16>
    %cst_8 = arith.constant dense<0.000000e+00> : vector<8x64xf32>
    %11 = tpu.matmul %9, %10, %cst_8 {dimension_numbers = #tpu.dot_dimension_numbers<[1], [0], [0], [1], [0, 0, 1, 1], [], []>} : vector<8x64xbf16>, vector<64x64xbf16>, vector<8x64xf32> -> vector<8x64xf32>
    %c0_9 = arith.constant 0 : index
    %c0_10 = arith.constant 0 : index
    %12 = vector.load %arg5[%c0_9, %c0_10] : memref<1x64xf32, #tpu.memory_space<vmem>>, vector<1x64xf32>
    %13 = vector.broadcast %12 : vector<1x64xf32> to vector<8x64xf32>
    %14 = arith.addf %11, %13 : vector<8x64xf32>
    %cst_11 = arith.constant 0.000000e+00 : f32
    %15 = vector.broadcast %cst_11 : f32 to vector<8x64xf32>
    %16 = arith.maximumf %14, %15 : vector<8x64xf32>
    %17 = arith.truncf %16 : vector<8x64xf32> to vector<8x64xbf16>
    %c0_12 = arith.constant 0 : index
    %c0_13 = arith.constant 0 : index
    %18 = vector.load %arg6[%c0_12, %c0_13] : memref<64x128xbf16, #tpu.memory_space<vmem>>, vector<64x128xbf16>
    %cst_14 = arith.constant dense<0.000000e+00> : vector<8x128xf32>
    %19 = tpu.matmul %17, %18, %cst_14 {dimension_numbers = #tpu.dot_dimension_numbers<[1], [0], [0], [1], [0, 0, 1, 1], [], []>} : vector<8x64xbf16>, vector<64x128xbf16>, vector<8x128xf32> -> vector<8x128xf32>
    %c0_15 = arith.constant 0 : index
    %c0_16 = arith.constant 0 : index
    %20 = vector.load %arg7[%c0_15, %c0_16] : memref<1x128xf32, #tpu.memory_space<vmem>>, vector<1x128xf32>
    %21 = vector.broadcast %20 : vector<1x128xf32> to vector<8x128xf32>
    %22 = arith.addf %19, %21 : vector<8x128xf32>
    %c0_17 = arith.constant 0 : index
    %c0_18 = arith.constant 0 : index
    %23 = vector.load %arg8[%c0_17, %c0_18] : memref<8x128xf32, #tpu.memory_space<vmem>>, vector<8x128xf32>
    tpu.vector_store %arg8[%c0_17, %c0_18], %22 {strides = array<i32>} : memref<8x128xf32, #tpu.memory_space<vmem>>, vector<8x128xf32>,
    return
  }
  func.func @transform_0(%arg0: i32) -> (i32, i32) {
    %c0_i32 = arith.constant 0 : i32
    %c0_i32_0 = arith.constant 0 : i32
    return %arg0, %c0_i32 : i32, i32
  }
  func.func @transform_1(%arg0: i32) -> (i32, i32) {
    %c0_i32 = arith.constant 0 : i32
    %c0_i32_0 = arith.constant 0 : i32
    %c0_i32_1 = arith.constant 0 : i32
    return %c0_i32, %c0_i32_0 : i32, i32
  }
  func.func @transform_2(%arg0: i32) -> (i32, i32) {
    %c0_i32 = arith.constant 0 : i32
    %c0_i32_0 = arith.constant 0 : i32
    %c0_i32_1 = arith.constant 0 : i32
    return %c0_i32, %c0_i32_0 : i32, i32
  }
  func.func @transform_3(%arg0: i32) -> (i32, i32) {
    %c0_i32 = arith.constant 0 : i32
    %c0_i32_0 = arith.constant 0 : i32
    %c0_i32_1 = arith.constant 0 : i32
    return %c0_i32, %c0_i32_0 : i32, i32
  }
  func.func @transform_4(%arg0: i32) -> (i32, i32) {
    %c0_i32 = arith.constant 0 : i32
    %c0_i32_0 = arith.constant 0 : i32
    %c0_i32_1 = arith.constant 0 : i32
    return %c0_i32, %c0_i32_0 : i32, i32
  }
  func.func @transform_5(%arg0: i32) -> (i32, i32) {
    %c0_i32 = arith.constant 0 : i32
    %c0_i32_0 = arith.constant 0 : i32
    %c0_i32_1 = arith.constant 0 : i32
    return %c0_i32, %c0_i32_0 : i32, i32
  }
  func.func @transform_6(%arg0: i32) -> (i32, i32) {
    %c0_i32 = arith.constant 0 : i32
    %c0_i32_0 = arith.constant 0 : i32
    %c0_i32_1 = arith.constant 0 : i32
    return %c0_i32, %c0_i32_0 : i32, i32
  }
  func.func @transform_7(%arg0: i32) -> (i32, i32) {
    %c0_i32 = arith.constant 0 : i32
    %c0_i32_0 = arith.constant 0 : i32
    return %arg0, %c0_i32 : i32, i32
  }
}

</mosaic_0001>

<bundles_post_ra>
// kernel: tpu_custom_call.1
= control target key start
LH: loop header
LB: loop body
LE: loop exit
PB: predicated region body
PF: predicated region fallthrough
CT: control target
= control target key end

     0   :  { %12 = vsyncpa [#allocation3], 0  ;;  %s787_s0 = inlined_call_operand.hbm [shape: f32[8,16], index: 0, kind: input, shape index: {}]   ;;  %s788_s1 = inlined_call_operand.hbm [shape: bf16[16,64], index: 1, kind: input, shape index: {}]   ;;  %s789_s2 = inlined_call_operand.hbm [shape: f32[1,64], index: 2, kind: input, shape index: {}]   ;;  %s790_s3 = inlined_call_operand.hbm [shape: bf16[64,64], index: 3, kind: input, shape index: {}]   ;;  %s791_s4 = inlined_call_operand.hbm [shape: f32[1,64], index: 4, kind: input, shape index: {}]   ;;  %s792_s5 = inlined_call_operand.hbm [shape: bf16[64,128], index: 5, kind: input, shape index: {}]   ;;  %s793_s6 = inlined_call_operand.hbm [shape: f32[1,128], index: 6, kind: input, shape index: {}]   ;;  %s794_s7 = inlined_call_operand.hbm [shape: f32[8,128], index: 7, kind: output, shape index: {}]  }
   0x1   :  { %13 = vsyncpa [#allocation6], 0 }
   0x2   :  { %14 = vsyncpa [#allocation9], 0 }
   0x3   :  { %15 = vsyncpa [#allocation12], 0 }
   0x4   :  { %16 = vsyncpa [#allocation4], 0  ;;  %s628_s24 = smov [#allocation5]   ;;  %s442_s28 = scalar_lea.hbm %s788_s1, 128 }
   0x5   :  { %s32_s25 = sshll.u32 %s628_s24, 4  ;;  %p443_p0 = scmp.ne.s32.totalorder %s788_s1, %s442_s28  ;;  %s33_s25 = int_to_ptr.vmem [resolvable:$true] %s32_s25 }
   0x6   :  { %p446_p1 = scmp.lt.u32.totalorder %s442_s28, %s788_s1 }
   0x8   :  { %p448_p2 = pnand %p446_p1, %p443_p0 }
   0xa   :  { %451 = shalt.err (!%p448_p2)
}
   0xb   :  { %s452_s10 = scalar_lea.vmem %s33_s25, 128  ;;  %p457_p4 = scmp.lt.s32.totalorder %s33_s25, %s33_s25 }
   0xc   :  { %p453_p3 = scmp.ne.s32.totalorder %s33_s25, %s452_s10  ;;  %p458_p5 = scmp.lt.s32.totalorder %s452_s10, %s452_s10 }
   0xe   :  { %p459_p6 = por %p458_p5, %p457_p4 }
  0x10   :  { %p460_p7 = pnand %p459_p6, %p453_p3 }
  0x12   :  { %463 = shalt.err (!%p460_p7)
}
  0x13   :  { %s629_s11 = smov 64   ;;  %s630_s12 = smov 4  }
  0x14   :  { %38 = dma.hbm_to_vmem [thread:$0]  %s788_s1, 128, %s33_s25, [#allocation6], %s629_s11, %s629_s11, %s630_s12  }
  0x15   :  { %s631_s15 = smov [#allocation8]   ;;  %s632_s17 = smov [#allocation11]  }
  0x16   :  { %s54_s16 = sshll.u32 %s631_s15, 4  ;;  %s76_s18 = sshll.u32 %s632_s17, 4  ;;  %s55_s16 = int_to_ptr.vmem [resolvable:$true] %s54_s16  ;;  %s77_s18 = int_to_ptr.vmem [resolvable:$true] %s76_s18 }
  0x17   :  { %s464_s21 = scalar_lea.hbm %s790_s3, 512 }
  0x18   :  { %p465_p8 = scmp.ne.s32.totalorder %s790_s3, %s464_s21  ;;  %p468_p9 = scmp.lt.u32.totalorder %s464_s21, %s790_s3 }
  0x1a   :  { %p470_p10 = pnand %p468_p9, %p465_p8 }
  0x1c   :  { %473 = shalt.err (!%p470_p10)
}
  0x1d   :  { %s474_s1 = scalar_lea.vmem %s55_s16, 512  ;;  %p479_p12 = scmp.lt.s32.totalorder %s55_s16, %s55_s16 }
  0x1e   :  { %p475_p11 = scmp.ne.s32.totalorder %s55_s16, %s474_s1  ;;  %p480_p13 = scmp.lt.s32.totalorder %s474_s1, %s474_s1 }
  0x20   :  { %p481_p0 = por %p480_p13, %p479_p12 }
  0x22   :  { %p482_p1 = pnand %p481_p0, %p475_p11 }
  0x24   :  { %485 = shalt.err (!%p482_p1)
}
  0x25   :  { %60 = dma.hbm_to_vmem [thread:$0]  %s790_s3, 512, %s55_s16, [#allocation9], %s629_s11, %s629_s11, %s630_s12  }
  0x26   :  { %s486_s30 = scalar_lea.hbm %s792_s5, 512 }
  0x27   :  { %p487_p2 = scmp.ne.s32.totalorder %s792_s5, %s486_s30  ;;  %p490_p3 = scmp.lt.u32.totalorder %s486_s30, %s792_s5 }
  0x29   :  { %p492_p4 = pnand %p490_p3, %p487_p2 }
  0x2b   :  { %495 = shalt.err (!%p492_p4)
}
  0x2c   :  { %s496_s14 = scalar_lea.vmem %s77_s18, 512  ;;  %p501_p6 = scmp.lt.s32.totalorder %s77_s18, %s77_s18 }
  0x2d   :  { %p497_p5 = scmp.ne.s32.totalorder %s77_s18, %s496_s14  ;;  %p502_p7 = scmp.lt.s32.totalorder %s496_s14, %s496_s14 }
  0x2f   :  { %p503_p8 = por %p502_p7, %p501_p6 }
  0x31   :  { %p504_p9 = pnand %p503_p8, %p497_p5 }
  0x33   :  { %507 = shalt.err (!%p504_p9)
}
  0x34   :  { %82 = dma.hbm_to_vmem [thread:$0]  %s792_s5, 512, %s77_s18, [#allocation12], %s629_s11, %s629_s11, %s630_s12  }
  0x35   :  { %s633_s16 = smov [#allocation2]   ;;  %s634_s19 = smov [#allocation7]  }
  0x36   :  { %s23_s17 = sshll.u32 %s633_s16, 4  ;;  %s45_s20 = sshll.u32 %s634_s19, 4  ;;  %s24_s17 = int_to_ptr.vmem [resolvable:$true] %s23_s17  ;;  %s46_s20 = int_to_ptr.vmem [resolvable:$true] %s45_s20 }
  0x37   :  { %s508_s23 = scalar_lea.hbm %s787_s0, 128 }
  0x38   :  { %p509_p10 = scmp.ne.s32.totalorder %s787_s0, %s508_s23  ;;  %p512_p11 = scmp.lt.u32.totalorder %s508_s23, %s787_s0 }
  0x3a   :  { %p514_p12 = pnand %p512_p11, %p509_p10 }
  0x3c   :  { %517 = shalt.err (!%p514_p12)
}
  0x3d   :  { %s518_s5 = scalar_lea.vmem %s24_s17, 128  ;;  %p523_p0 = scmp.lt.s32.totalorder %s24_s17, %s24_s17 }
  0x3e   :  { %p519_p13 = scmp.ne.s32.totalorder %s24_s17, %s518_s5  ;;  %p524_p1 = scmp.lt.s32.totalorder %s518_s5, %s518_s5 }
  0x40   :  { %p525_p2 = por %p524_p1, %p523_p0 }
  0x42   :  { %p526_p3 = pnand %p525_p2, %p519_p13 }
  0x44   :  { %529 = shalt.err (!%p526_p3)
}
  0x45   :  { %26 = dma.hbm_to_vmem [thread:$0]  %s787_s0, 128, %s24_s17, [#allocation3]  }
  0x46   :  { %s530_s28 = scalar_lea.hbm %s789_s2, 16 }
  0x47   :  { %p531_p4 = scmp.ne.s32.totalorder %s789_s2, %s530_s28  ;;  %p534_p5 = scmp.lt.u32.totalorder %s530_s28, %s789_s2 }
  0x49   :  { %p536_p6 = pnand %p534_p5, %p531_p4 }
  0x4b   :  { %539 = shalt.err (!%p536_p6)
}
  0x4c   :  { %s540_s10 = scalar_lea.vmem %s46_s20, 16  ;;  %s544_s13 = scalar_lea.vmem %s46_s20, 32 }
  0x4d   :  { %p541_p7 = scmp.ne.s32.totalorder %s46_s20, %s540_s10  ;;  %p545_p8 = scmp.lt.s32.totalorder %s46_s20, %s46_s20 }
  0x4e   :  { %p546_p9 = scmp.lt.s32.totalorder %s544_s13, %s540_s10 }
  0x50   :  { %p547_p10 = por %p546_p9, %p545_p8 }
  0x52   :  { %p548_p11 = pnand %p547_p10, %p541_p7 }
  0x54   :  { %551 = shalt.err (!%p548_p11)
}
  0x55   :  { %48 = dma.hbm_to_vmem [thread:$0]  %s789_s2, 16, %s46_s20, [#allocation6]  }
  0x56   :  { %s635_s3 = smov [#allocation10]   ;;  %s636_s16 = smov [#allocation13]  }
  0x57   :  { %s67_s15 = sshll.u32 %s635_s3, 4  ;;  %s89_s17 = sshll.u32 %s636_s16, 4  ;;  %s68_s15 = int_to_ptr.vmem [resolvable:$true] %s67_s15  ;;  %s90_s17 = int_to_ptr.vmem [resolvable:$true] %s89_s17 }
  0x58   :  { %s552_s22 = scalar_lea.hbm %s791_s4, 16 }
  0x59   :  { %p553_p12 = scmp.ne.s32.totalorder %s791_s4, %s552_s22  ;;  %p556_p13 = scmp.lt.u32.totalorder %s552_s22, %s791_s4 }
  0x5b   :  { %p558_p0 = pnand %p556_p13, %p553_p12 }
  0x5d   :  { %561 = shalt.err (!%p558_p0)
}
  0x5e   :  { %s562_s2 = scalar_lea.vmem %s68_s15, 16  ;;  %s566_s20 = scalar_lea.vmem %s68_s15, 32 }
  0x5f   :  { %p563_p1 = scmp.ne.s32.totalorder %s68_s15, %s562_s2  ;;  %p567_p2 = scmp.lt.s32.totalorder %s68_s15, %s68_s15 }
  0x60   :  { %p568_p3 = scmp.lt.s32.totalorder %s566_s20, %s562_s2 }
  0x62   :  { %p569_p4 = por %p568_p3, %p567_p2 }
  0x64   :  { %p570_p5 = pnand %p569_p4, %p563_p1 }
  0x66   :  { %573 = shalt.err (!%p570_p5)
}
  0x67   :  { %70 = dma.hbm_to_vmem [thread:$0]  %s791_s4, 16, %s68_s15, [#allocation9]  }
  0x68   :  { %s574_s18 = scalar_lea.hbm %s793_s6, 16 }
  0x69   :  { %p575_p6 = scmp.ne.s32.totalorder %s793_s6, %s574_s18  ;;  %p578_p7 = scmp.lt.u32.totalorder %s574_s18, %s793_s6 }
  0x6b   :  { %p580_p8 = pnand %p578_p7, %p575_p6 }
  0x6d   :  { %583 = shalt.err (!%p580_p8)
}
  0x6e   :  { %s584_s8 = scalar_lea.vmem %s90_s17, 16  ;;  %s588_s9 = scalar_lea.vmem %s90_s17, 32 }
  0x6f   :  { %p585_p9 = scmp.ne.s32.totalorder %s90_s17, %s584_s8  ;;  %p589_p10 = scmp.lt.s32.totalorder %s90_s17, %s90_s17 }
  0x70   :  { %p590_p11 = scmp.lt.s32.totalorder %s588_s9, %s584_s8 }
  0x72   :  { %p591_p12 = por %p590_p11, %p589_p10 }
  0x74   :  { %p592_p13 = pnand %p591_p12, %p585_p9 }
  0x76   :  { %595 = shalt.err (!%p592_p13)
}
  0x77   :  { %92 = dma.hbm_to_vmem [thread:$0]  %s793_s6, 16, %s90_s17, [#allocation12]  }
  0x78   :  { %618 = dma.done.wait [#allocation3], 128  }
  0x79   :  { %619 = vsyncadd [#allocation3], 4294967168 }
  0x7a   :  { %620 = dma.done.wait [#allocation6], 144  }
  0x7b   :  { %621 = vsyncadd [#allocation6], 4294967152 }
  0x7c   :  { %622 = dma.done.wait [#allocation9], 528  }
  0x7d   :  { %623 = vsyncadd [#allocation9], 4294966768 }
  0x7e   :  { %624 = dma.done.wait [#allocation12], 528  }
  0x7f   :  { %625 = vsyncadd [#allocation12], 4294966768  ;;  %v637_v0 = vmov 0.0   ;;  %vm638_vm0 = vmmov 0   ;;  %v433_v1 = vld [vmem:[#allocation5] sm:$0xff]   ;;  %v115_v2 = vld [vmem:[#allocation2] sm:$0xff] }
  0x80   :  { %391 = vmatprep.subr.bf16.mxu0 %v637_v0  ;;  %393 = vmatprep.mubr.msk.bf16.mxu0 %vm638_vm0, %v637_v0  ;;  %v116_v3 = vpack.c.bf16 %v115_v2, %v115_v2  ;;  %vm132_vm1 = vcmask 130048   ;;  %v434_v4 = vld [vmem:[#allocation8] sm:$0xff]   ;;  %v435_v5 = vld [vmem:[#allocation8 + $0x8] sm:$0xff]   ;;  %v436_v6 = vld [vmem:[#allocation8 + $0x10] sm:$0xff]   ;;  %vm217_vm2 = vcmask 523264   ;;  %s639_s6 = smov [#allocation14]  }
  0x81   :  { %397 = vmatprep.subr.bf16.mxu1 %v637_v0  ;;  %405 = vmatprep.mubr.msk.bf16.mxu1 %vm638_vm0, %v637_v0  ;;  %v437_v7 = vld [vmem:[#allocation8 + $0x18] sm:$0xff]   ;;  %v438_v8 = vld [vmem:[#allocation11] sm:$0xff]   ;;  %v439_v9 = vld [vmem:[#allocation11 + $0x8] sm:$0xff]   ;;  %s352_s13 = sshll.u32 %s639_s6, 4  ;;  %s353_s13 = int_to_ptr.vmem [resolvable:$true] %s352_s13 }
  0x82   :  { %392 = vmatpush3.bf16.msra.mxu0 %v433_v1  ;;  %398 = vmatpush3.bf16.msra.mxu1 %v434_v4  ;;  %v364_v10 = vld [vmem:[#allocation7] ss:$0 sm:$0xff]  ;;  %v440_v18 = vld [vmem:[#allocation11 + $0x10] sm:$0xff]   ;;  %v367_v20 = vld [vmem:[#allocation10] ss:$0 sm:$0xff]  ;;  %s596_s0 = scalar_lea.vmem %s353_s13, 128  ;;  %p601_p1 = scmp.lt.s32.totalorder %s353_s13, %s353_s13 }
  0x83   :  { %409 = vmatprep.subr.bf16.mxu0 %v637_v0  ;;  %399 = vmatprep.subr.bf16.mxu1 %v637_v0  ;;  %v441_v19 = vld [vmem:[#allocation11 + $0x18] sm:$0xff]   ;;  %v373_v28 = vld [vmem:[#allocation13] ss:$0 sm:$0xff]  ;;  %p597_p0 = scmp.ne.s32.totalorder %s353_s13, %s596_s0  ;;  %p602_p2 = scmp.lt.s32.totalorder %s596_s0, %s596_s0 }
  0x85   :  { %394 = vmatmul.mubr.msk.bf16.vlgmr.msra.gmra.mrb[0].mxu0 %vm132_vm1, %v116_v3  ;;  %p603_p3 = por %p602_p2, %p601_p1 }
  0x86   :  { %417 = vmatprep.mubr.msk.bf16.mxu0 %vm638_vm0, %v637_v0  ;;  %400 = vmatpush3.bf16.msra.mxu1 %v435_v5 }
  0x87   :  { %401 = vmatprep.subr.bf16.mxu1 %v637_v0  ;;  %410 = vmatpush3.bf16.msra.mxu0 %v438_v8  ;;  %p604_p4 = pnand %p603_p3, %p597_p0 }
  0x88   :  { %411 = vmatprep.subr.bf16.mxu0 %v637_v0 }
  0x8a   :  { %402 = vmatpush3.bf16.msra.mxu1 %v436_v6 }
  0x8b   :  { %403 = vmatprep.subr.bf16.mxu1 %v637_v0  ;;  %412 = vmatpush3.bf16.msra.mxu0 %v439_v9 }
  0x8c   :  { %413 = vmatprep.subr.bf16.mxu0 %v637_v0 }
  0x8e   :  { %404 = vmatpush3.bf16.msra.mxu1 %v437_v7 }
  0x8f   :  { %414 = vmatpush3.bf16.msra.mxu0 %v440_v18 }
  0x90   :  { %415 = vmatprep.subr.bf16.mxu0 %v637_v0 }
  0x93   :  { %416 = vmatpush3.bf16.msra.mxu0 %v441_v19 }
 0x158   :  { %v170_v11 = vpop.f32.mrb[0].mxu0 }
 0x159   :  { %v171_v12 = vadd.f32 %v364_v10, %v170_v11  ;;  %v395_v13 = vpop.f32.mrb[1].mxu0 }
 0x15a   :  { %v173_v14 = vpop.f32.mrb[2].mxu0 }
 0x15b   :  { %v176_v15 = vmax.f32 %v171_v12, 0.0  ;;  %v396_v16 = vpop.f32.mrb[3].mxu0 }
 0x15d   :  { %v177_v17 = vpack.c.bf16 %v176_v15, %v176_v15 }
 0x15f   :  { %406 = vmatmul.mubr.msk.bf16.vlgmr.msra.gmra.mrb[0].mxu1 %vm217_vm2, %v177_v17 }
 0x232   :  { %v255_v21 = vpop.f32.mrb[0].mxu1 }
 0x233   :  { %v256_v22 = vadd.f32 %v367_v20, %v255_v21  ;;  %v407_v23 = vpop.f32.mrb[1].mxu1 }
 0x234   :  { %v258_v24 = vpop.f32.mrb[2].mxu1 }
 0x235   :  { %v261_v25 = vmax.f32 %v256_v22, 0.0  ;;  %v408_v26 = vpop.f32.mrb[3].mxu1 }
 0x237   :  { %v262_v27 = vpack.c.bf16 %v261_v25, %v261_v25 }
 0x239   :  { %418 = vmatmul.mubr.msk.bf16.vlgmr.msra.gmra.mrb[4].mxu0 %vm217_vm2, %v262_v27 }
 0x30c   :  { %v339_v29 = vpop.f32.mrb[4].mxu0 }
 0x30d   :  { %v340_v30 = vadd.f32 %v373_v28, %v339_v29  ;;  %v419_v31 = vpop.f32.mrb[5].mxu0 }
 0x30e   :  { %v342_v32 = vpop.f32.mrb[6].mxu0 }
 0x30f   :  { %345 = vst [vmem:[#allocation14] sm:$0xff] %v340_v30  ;;  %v420_v33 = vpop.f32.mrb[7].mxu0 }
 0x310   :  { %607 = shalt.err (!%p604_p4)
}
 0x311   :  { %s608_s15 = scalar_lea.hbm %s794_s7, 128 }
 0x312   :  { %p609_p5 = scmp.ne.s32.totalorder %s794_s7, %s608_s15  ;;  %p612_p6 = scmp.lt.u32.totalorder %s608_s15, %s794_s7 }
 0x314   :  { %p614_p7 = pnand %p612_p6, %p609_p5 }
 0x316   :  { %617 = shalt.err (!%p614_p7)
}
 0x317   :  { %355 = dma.vmem_to_hbm [thread:$0]  %s353_s13, 128, %s794_s7, [#allocation4]  }
 0x318   :  { %626 = dma.done.wait [#allocation4], 128  }
 0x319   :  { %627 = vsyncadd [#allocation4], 4294967168 }
 0x31a   :  { %359 = vsyncpa [#allocation3], 1 }
 0x31b   :  { %360 = vsyncpa [#allocation6], 1 }
 0x31c   :  { %361 = vsyncpa [#allocation9], 1 }
 0x31d   :  { %362 = vsyncpa [#allocation12], 1 }
 0x31e   :  { %363 = vsyncpa [#allocation4], 1 }

</bundles_post_ra>
